<compile_context>
chip_gen: v7x
topology: tpu7x:2x2x1
jax: 0.10.0
libtpu: 0.0.40
codegen_flags: <defaults>
</compile_context>

<pallas_src>
import functools

import jax
import jax.numpy as jnp
from jax.experimental import pallas as pl
from jax.experimental.pallas import tpu as pltpu


def _round_up(x, m):
    return ((x + m - 1) // m) * m


def _vmem_capacity_bytes():
    try:
        return int(pltpu.get_tpu_info().vmem_capacity_bytes)
    except Exception:
        return 64 * 1024 * 1024          # conservative (v7x per-TC VMEM)


def _tile_vmem_bytes(tm, th, C):
    """Approximate VMEM footprint of one grid step (2-deep pipelining)."""
    x_b = tm * C * 2                     # bf16 activations
    w1_b = C * th * 2                    # bf16 W1 chunk
    w2_b = th * C * 2                    # bf16 W2 chunk
    b_b = (th + C) * 4                   # f32 biases
    o_b = tm * C * 4                     # f32 output / accumulator
    return 2 * (x_b + w1_b + w2_b + b_b + o_b)


def _choose_tm(M, block_m):
    """Row tile: multiple of 16 (bf16 sublane packing), small padding waste."""
    cands = sorted({c for c in (block_m, 256, 128, 64, 32, 16)
                    if 16 <= c <= block_m}, reverse=True) or [16]
    for c in cands:
        m_pad = _round_up(M, c)
        if (m_pad - M) * 8 <= m_pad:     # padded waste <= 12.5%
            return c
    return min(cands, key=lambda c: (_round_up(M, c) - M, -c))


def _ffn_kernel(x_ref, w1_ref, b1_ref, w2_ref, b2_ref, o_ref):
    """One (row-tile, hidden-chunk) step of Linear -> ReLU -> Linear.

    x_ref : (tm, C)  bf16  (resident across the H axis)
    w1_ref: (C, th)  bf16     b1_ref: (1, th) f32
    w2_ref: (th, C)  bf16     b2_ref: (1, C)  f32
    o_ref : (tm, C)  f32 output; its block index is constant along the H grid
            axis, so it stays VMEM-resident and serves as the accumulator.
    """
    h_idx = pl.program_id(1)

    # First matmul on this hidden chunk: bf16 inputs, f32 accumulation on MXU.
    h = jnp.dot(x_ref[...], w1_ref[...], preferred_element_type=jnp.float32)
    h = jnp.maximum(h + b1_ref[...], 0.0)            # bias + ReLU per H-chunk

    # Second matmul: this chunk's contribution to the output rows.
    contrib = jnp.dot(h.astype(w2_ref.dtype), w2_ref[...],
                      preferred_element_type=jnp.float32)

    @pl.when(h_idx == 0)
    def _():                                          # first chunk: assign
        o_ref[...] = contrib

    @pl.when(h_idx > 0)
    def _():                                          # later chunks: accumulate
        o_ref[...] += contrib

    @pl.when(h_idx == pl.num_programs(1) - 1)
    def _():                                          # finalize: add b2
        o_ref[...] += b2_ref[...]


@functools.partial(jax.jit, static_argnames=("block_m", "block_h"))
def feed_forward(x, w1, b1, w2, b2, *, block_m=None, block_h=None):
    """Eval-mode FeedForward: ReLU(x @ W1 + b1) @ W2 + b2.

    x: (B, T, C) f32.  Weights should already be bf16 (cast once at init) so
    no per-call cast / extra HBM round-trip is needed.  Dropout = identity.
    """
    B, T, C = x.shape
    H = w1.shape[1]                       # 4 * n_embd
    M = B * T

    # ---- generation-aware tiling / VMEM budget (all trace-time) ------------
    vmem_cap = _vmem_capacity_bytes()
    vmem_budget = int(vmem_cap * 0.8)     # leave headroom for compiler scratch
    if block_m is None:
        block_m = 512 if vmem_cap >= 96 * 1024 * 1024 else 256
    if block_h is None:
        block_h = 1024 if vmem_cap >= 96 * 1024 * 1024 else 512

    tm = _choose_tm(M, block_m)
    M_pad = _round_up(M, tm)
    # Give the 2nd TensorCore (v7x) a row tile to work on when possible.
    if M_pad // tm == 1 and tm >= 256:
        tm //= 2
        M_pad = _round_up(M, tm)

    # Hidden chunk: multiple of 128; shrink until the tile fits the budget.
    th = min(block_h, _round_up(H, 128))
    while _tile_vmem_bytes(tm, th, C) > vmem_budget and th > 128:
        th = max(128, th // 2)
    while _tile_vmem_bytes(tm, th, C) > vmem_budget and tm > 16:
        tm = max(16, tm // 2)
        M_pad = _round_up(M, tm)
    H_pad = _round_up(H, th)

    # ---- operands -----------------------------------------------------------
    x2d = x.reshape(M, C)
    if M_pad != M:
        x2d = jnp.pad(x2d, ((0, M_pad - M), (0, 0)))
    x2d = x2d.astype(jnp.bfloat16)        # activation cast is unavoidable
    w1b = w1 if w1.dtype == jnp.bfloat16 else w1.astype(jnp.bfloat16)
    w2b = w2 if w2.dtype == jnp.bfloat16 else w2.astype(jnp.bfloat16)
    b1_2d = b1.reshape(1, H).astype(jnp.float32)
    b2_2d = b2.reshape(1, C).astype(jnp.float32)
    if H_pad != H:
        # Zero-padded W1 columns / b1 entries give ReLU(0) = 0, and the
        # zero-padded W2 rows guarantee the padded hidden units contribute 0.
        w1b = jnp.pad(w1b, ((0, 0), (0, H_pad - H)))
        b1_2d = jnp.pad(b1_2d, ((0, 0), (0, H_pad - H)))
        w2b = jnp.pad(w2b, ((0, H_pad - H), (0, 0)))

    grid = (M_pad // tm, H_pad // th)
    n_row_tiles = grid[0]

    flops = 2 * M_pad * C * H_pad * 2     # two matmuls
    bytes_accessed = (M_pad * C * 2                                 # x  (bf16)
                      + n_row_tiles * (2 * C * H_pad * 2 + H_pad * 4)  # W1+W2+b1
                      + C * 4                                        # b2
                      + M_pad * C * 4)                               # out (f32)
    cost = pl.CostEstimate(flops=flops, transcendentals=0,
                           bytes_accessed=bytes_accessed)

    out2d = pl.pallas_call(
        _ffn_kernel,
        out_shape=jax.ShapeDtypeStruct((M_pad, C), jnp.float32),
        grid_spec=pltpu.PrefetchScalarGridSpec(
            num_scalar_prefetch=0,
            grid=grid,
            in_specs=[
                pl.BlockSpec((tm, C), lambda i, h: (i, 0)),   # x rows
                pl.BlockSpec((C, th), lambda i, h: (0, h)),   # W1 chunk
                pl.BlockSpec((1, th), lambda i, h: (0, h)),   # b1 chunk
                pl.BlockSpec((th, C), lambda i, h: (h, 0)),   # W2 chunk
                pl.BlockSpec((1, C), lambda i, h: (0, 0)),    # b2
            ],
            out_specs=pl.BlockSpec((tm, C), lambda i, h: (i, 0)),
        ),
        compiler_params=pltpu.CompilerParams(
            dimension_semantics=("parallel", "arbitrary"),
            vmem_limit_bytes=vmem_budget,
        ),
        cost_estimate=cost,
    )(x2d, w1b, b1_2d, w2b, b2_2d)

    return out2d[:M].reshape(B, T, C)


def init_params(key, n_embd):
    """nn.Linear-style U(-1/sqrt(in), 1/sqrt(in)) init.

    Weights are returned in bf16 (cast ONCE here, not per forward call);
    biases stay f32 (they are added on the f32 accumulation path).
    """
    h = 4 * n_embd
    k1, k2, k3, k4 = jax.random.split(key, 4)
    bound1 = 1.0 / jnp.sqrt(n_embd)
    bound2 = 1.0 / jnp.sqrt(h)
    w1 = jax.random.uniform(k1, (n_embd, h), jnp.float32, -bound1, bound1)
    b1 = jax.random.uniform(k2, (h,), jnp.float32, -bound1, bound1)
    w2 = jax.random.uniform(k3, (h, n_embd), jnp.float32, -bound2, bound2)
    b2 = jax.random.uniform(k4, (n_embd,), jnp.float32, -bound2, bound2)
    return w1.astype(jnp.bfloat16), b1, w2.astype(jnp.bfloat16), b2


if __name__ == "__main__":
    key = jax.random.PRNGKey(0)
    kx, kp = jax.random.split(key)

    # Small but lane-dense shapes: C = 128 (1 lane tile), H = 512, M = 16 rows.
    B, T, n_embd = 2, 8, 128
    x = jax.random.normal(kx, (B, T, n_embd), jnp.float32)
    w1, b1, w2, b2 = init_params(kp, n_embd)

    out = feed_forward(x, w1, b1, w2, b2)
    out = jax.block_until_ready(out)

    # Reference follows the same numeric path (bf16 MXU inputs, f32 accum,
    # dropout = identity in eval mode).
    xb = x.reshape(-1, n_embd).astype(jnp.bfloat16)
    h_ref = jnp.maximum(
        jnp.dot(xb, w1, preferred_element_type=jnp.float32) + b1, 0.0)
    ref = jnp.dot(h_ref.astype(jnp.bfloat16), w2,
                  preferred_element_type=jnp.float32) + b2
    ref = ref.reshape(B, T, n_embd)
    assert jnp.allclose(out, ref, atol=1e-2, rtol=1e-2), \
        float(jnp.max(jnp.abs(out - ref)))

    print("KERNEL_OK")
</pallas_src>

<mosaic_0001>
module attributes {stable_mosaic.version = 11 : i64} {
  func.func @_ffn_kernel(%arg0: i32, %arg1: i32, %arg2: memref<16x128xbf16, #tpu.memory_space<vmem>>, %arg3: memref<128x512xbf16, #tpu.memory_space<vmem>>, %arg4: memref<1x512xf32, #tpu.memory_space<vmem>>, %arg5: memref<512x128xbf16, #tpu.memory_space<vmem>>, %arg6: memref<1x128xf32, #tpu.memory_space<vmem>>, %arg7: memref<16x128xf32, #tpu.memory_space<vmem>>) attributes {dimension_semantics = [#tpu.dimension_semantics<parallel>, #tpu.dimension_semantics<arbitrary>], iteration_bounds = array<i64: 1, 1>, scalar_prefetch = 0 : i64, scratch_operands = 0 : i64, tpu.core_type = #tpu.core_type<tc>, window_params = [{transform_indices = @transform_0, window_bounds = array<i64: 16, 128>}, {transform_indices = @transform_1, window_bounds = array<i64: 128, 512>}, {transform_indices = @transform_2, window_bounds = array<i64: 1, 512>}, {transform_indices = @transform_3, window_bounds = array<i64: 512, 128>}, {pipeline_mode = #tpu.pipeline_mode<synchronous>, transform_indices = @transform_4, window_bounds = array<i64: 1, 128>}, {transform_indices = @transform_5, window_bounds = array<i64: 16, 128>}]} {
    %c0 = arith.constant 0 : index
    %c0_0 = arith.constant 0 : index
    %0 = vector.load %arg2[%c0, %c0_0] : memref<16x128xbf16, #tpu.memory_space<vmem>>, vector<16x128xbf16>
    %c0_1 = arith.constant 0 : index
    %c0_2 = arith.constant 0 : index
    %1 = vector.load %arg3[%c0_1, %c0_2] : memref<128x512xbf16, #tpu.memory_space<vmem>>, vector<128x512xbf16>
    %cst = arith.constant dense<0.000000e+00> : vector<16x512xf32>
    %2 = tpu.matmul %0, %1, %cst {dimension_numbers = #tpu.dot_dimension_numbers<[1], [0], [0], [1], [0, 0, 1, 1], [], []>} : vector<16x128xbf16>, vector<128x512xbf16>, vector<16x512xf32> -> vector<16x512xf32>
    %c0_3 = arith.constant 0 : index
    %c0_4 = arith.constant 0 : index
    %3 = vector.load %arg4[%c0_3, %c0_4] : memref<1x512xf32, #tpu.memory_space<vmem>>, vector<1x512xf32>
    %4 = vector.broadcast %3 : vector<1x512xf32> to vector<16x512xf32>
    %5 = arith.addf %2, %4 : vector<16x512xf32>
    %cst_5 = arith.constant 0.000000e+00 : f32
    %6 = vector.broadcast %cst_5 : f32 to vector<16x512xf32>
    %7 = arith.maximumf %5, %6 : vector<16x512xf32>
    %8 = arith.truncf %7 : vector<16x512xf32> to vector<16x512xbf16>
    %c0_6 = arith.constant 0 : index
    %c0_7 = arith.constant 0 : index
    %9 = vector.load %arg5[%c0_6, %c0_7] : memref<512x128xbf16, #tpu.memory_space<vmem>>, vector<512x128xbf16>
    %cst_8 = arith.constant dense<0.000000e+00> : vector<16x128xf32>
    %10 = tpu.matmul %8, %9, %cst_8 {dimension_numbers = #tpu.dot_dimension_numbers<[1], [0], [0], [1], [0, 0, 1, 1], [], []>} : vector<16x512xbf16>, vector<512x128xbf16>, vector<16x128xf32> -> vector<16x128xf32>
    %c0_i32 = arith.constant 0 : i32
    %11 = arith.cmpi eq, %arg1, %c0_i32 : i32
    %12 = arith.extui %11 : i1 to i32
    %c0_i32_9 = arith.constant 0 : i32
    %13 = arith.cmpi ne, %12, %c0_i32_9 : i32
    scf.if %13 {
      %c0_14 = arith.constant 0 : index
      %c0_15 = arith.constant 0 : index
      %20 = vector.load %arg7[%c0_14, %c0_15] : memref<16x128xf32, #tpu.memory_space<vmem>>, vector<16x128xf32>
      tpu.vector_store %arg7[%c0_14, %c0_15], %10 {strides = array<i32>} : memref<16x128xf32, #tpu.memory_space<vmem>>, vector<16x128xf32>,
    } else {
    }
    %c0_i32_10 = arith.constant 0 : i32
    %14 = arith.cmpi sgt, %arg1, %c0_i32_10 : i32
    %15 = arith.extui %14 : i1 to i32
    %c0_i32_11 = arith.constant 0 : i32
    %16 = arith.cmpi ne, %15, %c0_i32_11 : i32
    scf.if %16 {
      %c0_14 = arith.constant 0 : index
      %c0_15 = arith.constant 0 : index
      %20 = vector.load %arg7[%c0_14, %c0_15] : memref<16x128xf32, #tpu.memory_space<vmem>>, vector<16x128xf32>
      %21 = arith.addf %20, %10 : vector<16x128xf32>
      %c0_16 = arith.constant 0 : index
      %c0_17 = arith.constant 0 : index
      %22 = vector.load %arg7[%c0_16, %c0_17] : memref<16x128xf32, #tpu.memory_space<vmem>>, vector<16x128xf32>
      tpu.vector_store %arg7[%c0_16, %c0_17], %21 {strides = array<i32>} : memref<16x128xf32, #tpu.memory_space<vmem>>, vector<16x128xf32>,
    } else {
    }
    %c0_i32_12 = arith.constant 0 : i32
    %17 = arith.cmpi eq, %arg1, %c0_i32_12 : i32
    %18 = arith.extui %17 : i1 to i32
    %c0_i32_13 = arith.constant 0 : i32
    %19 = arith.cmpi ne, %18, %c0_i32_13 : i32
    scf.if %19 {
      %c0_14 = arith.constant 0 : index
      %c0_15 = arith.constant 0 : index
      %20 = vector.load %arg7[%c0_14, %c0_15] : memref<16x128xf32, #tpu.memory_space<vmem>>, vector<16x128xf32>
      %c0_16 = arith.constant 0 : index
      %c0_17 = arith.constant 0 : index
      %21 = vector.load %arg6[%c0_16, %c0_17] : memref<1x128xf32, #tpu.memory_space<vmem>>, vector<1x128xf32>
      %22 = vector.broadcast %21 : vector<1x128xf32> to vector<16x128xf32>
      %23 = arith.addf %20, %22 : vector<16x128xf32>
      %c0_18 = arith.constant 0 : index
      %c0_19 = arith.constant 0 : index
      %24 = vector.load %arg7[%c0_18, %c0_19] : memref<16x128xf32, #tpu.memory_space<vmem>>, vector<16x128xf32>
      tpu.vector_store %arg7[%c0_18, %c0_19], %23 {strides = array<i32>} : memref<16x128xf32, #tpu.memory_space<vmem>>, vector<16x128xf32>,
    } else {
    }
    return
  }
  func.func @transform_0(%arg0: i32, %arg1: i32) -> (i32, i32) {
    %c0_i32 = arith.constant 0 : i32
    %c0_i32_0 = arith.constant 0 : i32
    return %arg0, %c0_i32 : i32, i32
  }
  func.func @transform_1(%arg0: i32, %arg1: i32) -> (i32, i32) {
    %c0_i32 = arith.constant 0 : i32
    %c0_i32_0 = arith.constant 0 : i32
    return %c0_i32, %arg1 : i32, i32
  }
  func.func @transform_2(%arg0: i32, %arg1: i32) -> (i32, i32) {
    %c0_i32 = arith.constant 0 : i32
    %c0_i32_0 = arith.constant 0 : i32
    return %c0_i32, %arg1 : i32, i32
  }
  func.func @transform_3(%arg0: i32, %arg1: i32) -> (i32, i32) {
    %c0_i32 = arith.constant 0 : i32
    %c0_i32_0 = arith.constant 0 : i32
    return %arg1, %c0_i32 : i32, i32
  }
  func.func @transform_4(%arg0: i32, %arg1: i32) -> (i32, i32) {
    %c0_i32 = arith.constant 0 : i32
    %c0_i32_0 = arith.constant 0 : i32
    %c0_i32_1 = arith.constant 0 : i32
    return %c0_i32, %c0_i32_0 : i32, i32
  }
  func.func @transform_5(%arg0: i32, %arg1: i32) -> (i32, i32) {
    %c0_i32 = arith.constant 0 : i32
    %c0_i32_0 = arith.constant 0 : i32
    return %arg0, %c0_i32 : i32, i32
  }
}

</mosaic_0001>

<bundles_post_ra>
// kernel: feed_forward.1
= control target key start
LH: loop header
LB: loop body
LE: loop exit
PB: predicated region body
PF: predicated region fallthrough
CT: control target
= control target key end

     0   :  { %10 = vsyncpa [#allocation3], 0  ;;  %s1116_s0 = inlined_call_operand.vmem [shape: bf16[16,128], index: 0, kind: input, shape index: {}]   ;;  %s1117_s1 = inlined_call_operand.hbm [shape: bf16[128,512], index: 1, kind: input, shape index: {}]   ;;  %s1118_s2 = inlined_call_operand.vmem [shape: f32[1,512], index: 2, kind: input, shape index: {}]   ;;  %s1119_s3 = inlined_call_operand.hbm [shape: bf16[512,128], index: 3, kind: input, shape index: {}]   ;;  %s1120_s4 = inlined_call_operand.vmem [shape: f32[1,128], index: 4, kind: input, shape index: {}]   ;;  %s1121_s5 = inlined_call_operand.hbm [shape: f32[16,128], index: 5, kind: output, shape index: {}]  }
   0x1   :  { %11 = vsyncpa [#allocation6], 0 }
   0x2   :  { %12 = vsyncpa [#allocation4], 0  ;;  %s1031_s18 = smov [#allocation2]   ;;  %s959_s22 = scalar_lea.hbm %s1117_s1, 4096 }
   0x3   :  { %s20_s19 = sshll.u32 %s1031_s18, 4  ;;  %p960_p0 = scmp.ne.s32.totalorder %s1117_s1, %s959_s22  ;;  %s21_s19 = int_to_ptr.vmem [resolvable:$true] %s20_s19 }
   0x4   :  { %p963_p1 = scmp.lt.u32.totalorder %s959_s22, %s1117_s1 }
   0x6   :  { %p965_p2 = pnand %p963_p1, %p960_p0 }
   0x8   :  { %968 = shalt.err (!%p965_p2)
}
   0x9   :  { %s969_s27 = scalar_lea.vmem %s21_s19, 4096  ;;  %p974_p4 = scmp.lt.s32.totalorder %s21_s19, %s21_s19 }
   0xa   :  { %p970_p3 = scmp.ne.s32.totalorder %s21_s19, %s969_s27  ;;  %p975_p5 = scmp.lt.s32.totalorder %s969_s27, %s969_s27 }
   0xc   :  { %p976_p6 = por %p975_p5, %p974_p4 }
   0xe   :  { %p977_p7 = pnand %p976_p6, %p970_p3 }
  0x10   :  { %980 = shalt.err (!%p977_p7)
}
  0x11   :  { %s1032_s28 = smov 256   ;;  %s1033_s29 = smov 16  }
  0x12   :  { %26 = dma.hbm_to_vmem [thread:$0]  %s1117_s1, 4096, %s21_s19, [#allocation3], %s1032_s28, %s1032_s28, %s1033_s29  }
  0x13   :  { %s1034_s7 = smov [#allocation5]   ;;  %s981_s11 = scalar_lea.hbm %s1119_s3, 4096 }
  0x14   :  { %s34_s8 = sshll.u32 %s1034_s7, 4  ;;  %p982_p8 = scmp.ne.s32.totalorder %s1119_s3, %s981_s11  ;;  %s35_s8 = int_to_ptr.vmem [resolvable:$true] %s34_s8 }
  0x15   :  { %p985_p9 = scmp.lt.u32.totalorder %s981_s11, %s1119_s3 }
  0x17   :  { %p987_p10 = pnand %p985_p9, %p982_p8 }
  0x19   :  { %990 = shalt.err (!%p987_p10)
}
  0x1a   :  { %s991_s16 = scalar_lea.vmem %s35_s8, 4096  ;;  %p996_p12 = scmp.lt.s32.totalorder %s35_s8, %s35_s8 }
  0x1b   :  { %p992_p11 = scmp.ne.s32.totalorder %s35_s8, %s991_s16  ;;  %p997_p13 = scmp.lt.s32.totalorder %s991_s16, %s991_s16 }
  0x1d   :  { %p998_p0 = por %p997_p13, %p996_p12 }
  0x1f   :  { %p999_p1 = pnand %p998_p0, %p992_p11 }
  0x21   :  { %1002 = shalt.err (!%p999_p1)
}
  0x22   :  { %s1035_s1 = smov 64   ;;  %s1036_s17 = smov 4  }
  0x23   :  { %40 = dma.hbm_to_vmem [thread:$0]  %s1119_s3, 4096, %s35_s8, [#allocation6], %s1035_s1, %s1035_s1, %s1036_s17  }
  0x24   :  { %1025 = dma.done.wait [#allocation3], 4096  }
  0x25   :  { %1026 = vsyncadd [#allocation3], 4294963200 }
  0x26   :  { %1027 = dma.done.wait [#allocation6], 4096  }
  0x27   :  { %1028 = vsyncadd [#allocation6], 4294963200  ;;  %v1037_v0 = vmov 0   ;;  %v878_v1 = vld [vmem:[#allocation2 + $0x4] ss:$16 sps:$4 sm:$0xff]   ;;  %v931_v38 = vld [vmem:[#allocation5 + $0x48] sm:$0xff]  }
  0x28   :  { %304 = vmatprep.mubr.bf16.mxu0 %v1037_v0  ;;  %347 = vmatprep.mubr.bf16.mxu1 %v1037_v0  ;;  %v880_v2 = vld [vmem:[#allocation2 + $0xc] ss:$16 sps:$4 sm:$0xff]   ;;  %v882_v3 = vld [vmem:[#allocation2] ss:$16 sps:$4 sm:$0xff]   ;;  %v883_v4 = vld [vmem:[#allocation2 + $0x8] ss:$16 sps:$4 sm:$0xff]  }
  0x29   :  { %272 = vmatprep.subr.bf16.mxu0 %v878_v1  ;;  %315 = vmatprep.subr.bf16.mxu1 %v880_v2  ;;  %v884_v5 = vld [vmem:[#allocation2 + $0x24] ss:$16 sps:$4 sm:$0xff]   ;;  %v886_v6 = vld [vmem:[#allocation2 + $0x2c] ss:$16 sps:$4 sm:$0xff]   ;;  %v888_v7 = vld [vmem:[#allocation2 + $0x20] ss:$16 sps:$4 sm:$0xff]   ;;  %v86_v2 = vlaneseq }
  0x2a   :  { %273 = vmatpush1.bf16.msra.mxu0 %v882_v3  ;;  %316 = vmatpush1.bf16.msra.mxu1 %v883_v4  ;;  %v889_v8 = vld [vmem:[#allocation2 + $0x28] ss:$16 sps:$4 sm:$0xff]   ;;  %v890_v9 = vld [vmem:[#allocation2 + $0x44] ss:$16 sps:$4 sm:$0xff]   ;;  %v892_v10 = vld [vmem:[#allocation2 + $0x4c] ss:$16 sps:$4 sm:$0xff]  }
  0x2b   :  { %274 = vmatprep.subr.bf16.mxu0 %v884_v5  ;;  %317 = vmatprep.subr.bf16.mxu1 %v886_v6  ;;  %v894_v11 = vld [vmem:[#allocation2 + $0x40] ss:$16 sps:$4 sm:$0xff]   ;;  %v895_v12 = vld [vmem:[#allocation2 + $0x48] ss:$16 sps:$4 sm:$0xff]   ;;  %v896_v13 = vld [vmem:[#allocation2 + $0x64] ss:$16 sps:$4 sm:$0xff]  }
  0x2c   :  { %v898_v14 = vld [vmem:[#allocation2 + $0x6c] ss:$16 sps:$4 sm:$0xff]   ;;  %v900_v15 = vld [vmem:[#allocation2 + $0x60] ss:$16 sps:$4 sm:$0xff]   ;;  %v901_v16 = vld [vmem:[#allocation2 + $0x68] ss:$16 sps:$4 sm:$0xff]  }
  0x2d   :  { %v902_v17 = vld [vmem:[#allocation2 + $0x84] ss:$16 sps:$4 sm:$0xff]   ;;  %v904_v18 = vld [vmem:[#allocation2 + $0x8c] ss:$16 sps:$4 sm:$0xff]   ;;  %v906_v19 = vld [vmem:[#allocation2 + $0x80] ss:$16 sps:$4 sm:$0xff]  }
  0x2e   :  { %275 = vmatpush1.bf16.msra.mxu0 %v888_v7  ;;  %318 = vmatpush1.bf16.msra.mxu1 %v889_v8  ;;  %v907_v20 = vld [vmem:[#allocation2 + $0x88] ss:$16 sps:$4 sm:$0xff]   ;;  %v908_v21 = vld [vmem:[#allocation2 + $0xa4] ss:$16 sps:$4 sm:$0xff]   ;;  %v910_v22 = vld [vmem:[#allocation2 + $0xac] ss:$16 sps:$4 sm:$0xff]  }
  0x2f   :  { %276 = vmatprep.subr.bf16.mxu0 %v890_v9  ;;  %319 = vmatprep.subr.bf16.mxu1 %v892_v10  ;;  %v912_v23 = vld [vmem:[#allocation2 + $0xa0] ss:$16 sps:$4 sm:$0xff]   ;;  %v913_v24 = vld [vmem:[#allocation2 + $0xa8] ss:$16 sps:$4 sm:$0xff]   ;;  %v914_v25 = vld [vmem:[#allocation2 + $0xc4] ss:$16 sps:$4 sm:$0xff]  }
  0x30   :  { %v916_v26 = vld [vmem:[#allocation2 + $0xcc] ss:$16 sps:$4 sm:$0xff]   ;;  %v918_v27 = vld [vmem:[#allocation2 + $0xc0] ss:$16 sps:$4 sm:$0xff]   ;;  %v919_v28 = vld [vmem:[#allocation2 + $0xc8] ss:$16 sps:$4 sm:$0xff]  }
  0x31   :  { %v920_v29 = vld [vmem:[#allocation2 + $0xe4] ss:$16 sps:$4 sm:$0xff]   ;;  %v922_v30 = vld [vmem:[#allocation2 + $0xec] ss:$16 sps:$4 sm:$0xff]   ;;  %v924_v31 = vld [vmem:[#allocation2 + $0xe0] ss:$16 sps:$4 sm:$0xff]  }
  0x32   :  { %277 = vmatpush1.bf16.msra.mxu0 %v894_v11  ;;  %320 = vmatpush1.bf16.msra.mxu1 %v895_v12  ;;  %v925_v32 = vld [vmem:[#allocation2 + $0xe8] ss:$16 sps:$4 sm:$0xff]   ;;  %v927_v33 = vld [vmem:[#allocation5 + $0x40] sm:$0xff]   ;;  %v935_v42 = vld [vmem:[#allocation5 + $0x50] sm:$0xff]   ;;  %v87_v3 = vshrl.u32 %v86_v2, 7  ;;  %s1038_s23 = smov [#allocation7]  }
  0x33   :  { %278 = vmatprep.subr.bf16.mxu0 %v896_v13  ;;  %321 = vmatprep.subr.bf16.mxu1 %v898_v14  ;;  %v926_v34 = vld [vmem:[%s1116_s0] sm:$0xff]   ;;  %v932_v39 = vld [vmem:[#allocation5 + $0xc8] sm:$0xff]   ;;  %v936_v43 = vld [vmem:[#allocation5 + $0xd0] sm:$0xff]   ;;  %s745_s24 = sshll.u32 %s1038_s23, 4  ;;  %s746_s24 = int_to_ptr.vmem [resolvable:$true] %s745_s24 }
  0x34   :  { %v928_v35 = vld [vmem:[#allocation5 + $0xc0] sm:$0xff]   ;;  %v933_v40 = vld [vmem:[#allocation5 + $0x8] sm:$0xff]   ;;  %v937_v44 = vld [vmem:[#allocation5 + $0x10] sm:$0xff]   ;;  %v88_v4 = vsub.s32 0, %v87_v3  ;;  %v96_v5 = vsub.s32 2, %v87_v3  ;;  %v92_v7 = vsub.s32 1, %v87_v3  ;;  %p1008_p3 = scmp.lt.s32.totalorder %s746_s24, %s746_s24 }
  0x35   :  { %v929_v36 = vld [vmem:[#allocation5] sm:$0xff]   ;;  %v934_v41 = vld [vmem:[#allocation5 + $0x88] sm:$0xff]   ;;  %v938_v45 = vld [vmem:[#allocation5 + $0x90] sm:$0xff]   ;;  %v100_v8 = vsub.s32 3, %v87_v3  ;;  %s1003_s25 = scalar_lea.vmem %s746_s24, 256 }
  0x36   :  { %279 = vmatpush1.bf16.msra.mxu0 %v900_v15  ;;  %322 = vmatpush1.bf16.msra.mxu1 %v901_v16  ;;  %v930_v37 = vld [vmem:[#allocation5 + $0x80] sm:$0xff]   ;;  %v939_v46 = vld [vmem:[#allocation5 + $0x58] sm:$0xff]   ;;  %v947_v54 = vld [vmem:[#allocation5 + $0x68] sm:$0xff]   ;;  %p1004_p2 = scmp.ne.s32.totalorder %s746_s24, %s1003_s25  ;;  %p1009_p4 = scmp.lt.s32.totalorder %s1003_s25, %s1003_s25 }
  0x37   :  { %280 = vmatprep.subr.bf16.mxu0 %v902_v17  ;;  %323 = vmatprep.subr.bf16.mxu1 %v904_v18  ;;  %v940_v47 = vld [vmem:[#allocation5 + $0xd8] sm:$0xff]   ;;  %v943_v50 = vld [vmem:[#allocation5 + $0x60] sm:$0xff]   ;;  %v948_v55 = vld [vmem:[#allocation5 + $0xe8] sm:$0xff]  }
  0x38   :  { %v941_v48 = vld [vmem:[#allocation5 + $0x18] sm:$0xff]   ;;  %v944_v51 = vld [vmem:[#allocation5 + $0xe0] sm:$0xff]   ;;  %v949_v56 = vld [vmem:[#allocation5 + $0x28] sm:$0xff]   ;;  %p1010_p5 = por %p1009_p4, %p1008_p3 }
  0x39   :  { %v942_v49 = vld [vmem:[#allocation5 + $0x98] sm:$0xff]   ;;  %v945_v52 = vld [vmem:[#allocation5 + $0x20] sm:$0xff]   ;;  %v950_v57 = vld [vmem:[#allocation5 + $0xa8] sm:$0xff]  }
  0x3a   :  { %281 = vmatpush1.bf16.msra.mxu0 %v906_v19  ;;  %324 = vmatpush1.bf16.msra.mxu1 %v907_v20  ;;  %v946_v53 = vld [vmem:[#allocation5 + $0xa0] sm:$0xff]   ;;  %v951_v58 = vld [vmem:[#allocation5 + $0x70] sm:$0xff]   ;;  %v955_v62 = vld [vmem:[#allocation5 + $0x78] sm:$0xff]   ;;  %p1011_p6 = pnand %p1010_p5, %p1004_p2 }
  0x3b   :  { %282 = vmatprep.subr.bf16.mxu0 %v908_v21  ;;  %325 = vmatprep.subr.bf16.mxu1 %v910_v22  ;;  %v952_v59 = vld [vmem:[#allocation5 + $0xf0] sm:$0xff]   ;;  %v956_v63 = vld [vmem:[#allocation5 + $0xf8] sm:$0xff]   ;;  %v84_v6 = vld [vmem:[%s1118_s2] sm:$0xf] }
  0x3c   :  { %v953_v60 = vld [vmem:[#allocation5 + $0x30] sm:$0xff]   ;;  %v957_v0 = vld [vmem:[#allocation5 + $0x38] sm:$0xff]   ;;  %v89_v9 = vrot.slane %v84_v6, %v88_v4  ;;  %v97_v10 = vrot.slane %v84_v6, %v96_v5  ;;  %v93_v11 = vrot.slane %v84_v6, %v92_v7  ;;  %v101_v12 = vrot.slane %v84_v6, %v100_v8 }
  0x3d   :  { %v954_v61 = vld [vmem:[#allocation5 + $0xb0] sm:$0xff]   ;;  %v958_v1 = vld [vmem:[#allocation5 + $0xb8] sm:$0xff]  }
  0x3e   :  { %283 = vmatpush1.bf16.msra.mxu0 %v912_v23  ;;  %326 = vmatpush1.bf16.msra.mxu1 %v913_v24 }
  0x3f   :  { %284 = vmatprep.subr.bf16.mxu0 %v914_v25  ;;  %327 = vmatprep.subr.bf16.mxu1 %v916_v26 }
  0x42   :  { %285 = vmatpush1.bf16.msra.mxu0 %v918_v27  ;;  %328 = vmatpush1.bf16.msra.mxu1 %v919_v28 }
  0x43   :  { %286 = vmatprep.subr.bf16.mxu0 %v920_v29  ;;  %329 = vmatprep.subr.bf16.mxu1 %v922_v30 }
  0x46   :  { %287 = vmatpush1.bf16.msra.mxu0 %v924_v31  ;;  %330 = vmatpush1.bf16.msra.mxu1 %v925_v32 }
  0x47   :  { %824 = vmatprep.subr.bf16.mxu0 %v927_v33  ;;  %846 = vmatprep.subr.bf16.mxu1 %v928_v35 }
  0x49   :  { %305 = vmatmul.mubr.bf16.vlgmr.msra.gmra.mrb[0].mxu0 %v926_v34  ;;  %348 = vmatmul.mubr.bf16.vlgmr.msra.gmra.mrb[0].mxu1 %v926_v34 }
  0x4a   :  { %825 = vmatpush3.bf16.msra.mxu0 %v929_v36  ;;  %847 = vmatpush3.bf16.msra.mxu1 %v930_v37 }
  0x4b   :  { %826 = vmatprep.subr.bf16.mxu0 %v931_v38  ;;  %848 = vmatprep.subr.bf16.mxu1 %v932_v39 }
  0x4e   :  { %827 = vmatpush3.bf16.msra.mxu0 %v933_v40  ;;  %849 = vmatpush3.bf16.msra.mxu1 %v934_v41 }
  0x4f   :  { %828 = vmatprep.subr.bf16.mxu0 %v935_v42  ;;  %850 = vmatprep.subr.bf16.mxu1 %v936_v43 }
  0x52   :  { %829 = vmatpush3.bf16.msra.mxu0 %v937_v44  ;;  %851 = vmatpush3.bf16.msra.mxu1 %v938_v45 }
  0x53   :  { %830 = vmatprep.subr.bf16.mxu0 %v939_v46  ;;  %852 = vmatprep.subr.bf16.mxu1 %v940_v47 }
  0x56   :  { %831 = vmatpush3.bf16.msra.mxu0 %v941_v48  ;;  %853 = vmatpush3.bf16.msra.mxu1 %v942_v49 }
  0x57   :  { %832 = vmatprep.subr.bf16.mxu0 %v943_v50  ;;  %854 = vmatprep.subr.bf16.mxu1 %v944_v51  ;;  %v823_v51 = vld [vmem:[%s1120_s4] ss:$0 sm:$0xff] }
  0x5a   :  { %833 = vmatpush3.bf16.msra.mxu0 %v945_v52  ;;  %855 = vmatpush3.bf16.msra.mxu1 %v946_v53 }
  0x5b   :  { %834 = vmatprep.subr.bf16.mxu0 %v947_v54  ;;  %856 = vmatprep.subr.bf16.mxu1 %v948_v55 }
  0x5e   :  { %835 = vmatpush3.bf16.msra.mxu0 %v949_v56  ;;  %857 = vmatpush3.bf16.msra.mxu1 %v950_v57 }
  0x5f   :  { %836 = vmatprep.subr.bf16.mxu0 %v951_v58  ;;  %858 = vmatprep.subr.bf16.mxu1 %v952_v59 }
  0x62   :  { %837 = vmatpush3.bf16.msra.mxu0 %v953_v60  ;;  %859 = vmatpush3.bf16.msra.mxu1 %v954_v61 }
  0x63   :  { %838 = vmatprep.subr.bf16.mxu0 %v955_v62  ;;  %860 = vmatprep.subr.bf16.mxu1 %v956_v63 }
  0x66   :  { %839 = vmatpush3.bf16.msra.mxu0 %v957_v0  ;;  %861 = vmatpush3.bf16.msra.mxu1 %v958_v1 }
 0x11c   :  { %v306_v13 = vpop.f32.mrb[0].mxu0  ;;  %v349_v14 = vpop.f32.mrb[0].mxu1 }
 0x11d   :  { %v307_v15 = vadd.f32 %v306_v13, %v89_v9  ;;  %v350_v16 = vadd.f32 %v349_v14, %v97_v10  ;;  %v308_v17 = vpop.f32.mrb[1].mxu0  ;;  %v351_v18 = vpop.f32.mrb[1].mxu1 }
 0x11e   :  { %v309_v19 = vadd.f32 %v308_v17, %v93_v11  ;;  %v352_v20 = vadd.f32 %v351_v18, %v101_v12  ;;  %v310_v21 = vpop.f32.mrb[2].mxu0  ;;  %v353_v22 = vpop.f32.mrb[2].mxu1 }
 0x11f   :  { %v311_v23 = vadd.f32 %v310_v21, %v89_v9  ;;  %v354_v24 = vadd.f32 %v353_v22, %v97_v10  ;;  %v312_v25 = vpop.f32.mrb[3].mxu0  ;;  %v355_v26 = vpop.f32.mrb[3].mxu1  ;;  %v358_v29 = vmax.f32 %v307_v15, 0.0  ;;  %v360_v30 = vmax.f32 %v350_v16, 0.0 }
 0x120   :  { %v313_v27 = vadd.f32 %v312_v25, %v93_v11  ;;  %v356_v28 = vadd.f32 %v355_v26, %v101_v12  ;;  %v359_v33 = vmax.f32 %v309_v19, 0.0  ;;  %v361_v34 = vmax.f32 %v352_v20, 0.0 }
 0x121   :  { %v362_v31 = vmax.f32 %v311_v23, 0.0  ;;  %v364_v32 = vmax.f32 %v354_v24, 0.0 }
 0x122   :  { %v363_v35 = vmax.f32 %v313_v27, 0.0  ;;  %v365_v36 = vmax.f32 %v356_v28, 0.0 }
 0x123   :  { %v366_v37 = vpack.c.bf16 %v362_v31, %v358_v29  ;;  %v368_v38 = vpack.c.bf16 %v364_v32, %v360_v30 }
 0x124   :  { %v367_v39 = vpack.c.bf16 %v363_v35, %v359_v33  ;;  %v369_v40 = vpack.c.bf16 %v365_v36, %v361_v34 }
 0x126   :  { %658 = vmatprep.mubr.bf16.mxu0 %v367_v39  ;;  %699 = vmatprep.mubr.bf16.mxu1 %v369_v40 }
 0x127   :  { %659 = vmatmul.mubr.bf16.vlgmr.msra.gmra.mrb[4].mxu0 %v366_v37  ;;  %700 = vmatmul.mubr.bf16.vlgmr.msra.gmra.mrb[4].mxu1 %v368_v38 }
 0x1fa   :  { %v840_v41 = vpop.f32.mrb[4].mxu0  ;;  %v862_v42 = vpop.f32.mrb[4].mxu1 }
 0x1fb   :  { %v841_v43 = vpop.f32.mrb[5].mxu0  ;;  %v863_v44 = vpop.f32.mrb[5].mxu1 }
 0x1fc   :  { %v842_v45 = vadd.f32 %v841_v43, %v840_v41  ;;  %v864_v46 = vadd.f32 %v863_v44, %v862_v42  ;;  %v843_v47 = vpop.f32.mrb[6].mxu0  ;;  %v865_v48 = vpop.f32.mrb[6].mxu1 }
 0x1fd   :  { %v844_v49 = vpop.f32.mrb[7].mxu0  ;;  %v866_v50 = vpop.f32.mrb[7].mxu1 }
 0x1fe   :  { %v702_v52 = vadd.f32 %v864_v46, %v842_v45  ;;  %v845_v53 = vadd.f32 %v844_v49, %v843_v47  ;;  %v867_v54 = vadd.f32 %v866_v50, %v865_v48 }
 0x200   :  { %v705_v55 = vadd.f32 %v867_v54, %v845_v53  ;;  %v736_v56 = vadd.f32 %v823_v51, %v702_v52 }
 0x202   :  { %v737_v57 = vadd.f32 %v823_v51, %v705_v55  ;;  %738 = vst [vmem:[#allocation7] sm:$0xff] %v736_v56 }
 0x204   :  { %739 = vst [vmem:[#allocation7 + $0x8] sm:$0xff] %v737_v57 }
 0x205   :  { %1014 = shalt.err (!%p1011_p6)
}
 0x206   :  { %s1015_s27 = scalar_lea.hbm %s1121_s5, 256 }
 0x207   :  { %p1016_p7 = scmp.ne.s32.totalorder %s1121_s5, %s1015_s27  ;;  %p1019_p8 = scmp.lt.u32.totalorder %s1015_s27, %s1121_s5 }
 0x209   :  { %p1021_p9 = pnand %p1019_p8, %p1016_p7 }
 0x20b   :  { %1024 = shalt.err (!%p1021_p9)
}
 0x20c   :  { %s1039_s7 = smov 128   ;;  %s1040_s8 = smov 8  }
 0x20d   :  { %751 = dma.vmem_to_hbm [thread:$0]  %s746_s24, 256, %s1121_s5, [#allocation4], %s1039_s7, %s1039_s7, %s1040_s8  }
 0x20e   :  { %1029 = dma.done.wait [#allocation4], 256  }
 0x20f   :  { %1030 = vsyncadd [#allocation4], 4294967040 }
 0x210   :  { %755 = vsyncpa [#allocation3], 1 }
 0x211   :  { %756 = vsyncpa [#allocation6], 1 }
 0x212   :  { %757 = vsyncpa [#allocation4], 1 }

</bundles_post_ra>
